<compile_context>
chip_gen: v6e
topology: v6e:2x2x1
jax: 0.10.0
libtpu: 0.0.40
codegen_flags: <defaults>
</compile_context>

<pallas_src>
import jax
import jax.numpy as jnp
from jax.experimental import pallas as pl
from jax.experimental.pallas import tpu as pltpu

EPS = 1e-8          # tsl.epsilon
LANES = 512         # lane-dense last dim (multiple of 128)
BLOCK_ROWS = 512    # rows per grid step (multiple of 8); ~1 MiB f32 per buffer


def _sampler_kernel(inv_tau_ref, scores_ref, noise_ref, out_ref):
    # inv_tau_ref lives in SMEM (scalar prefetch); scores/noise/out are VMEM tiles.
    s = scores_ref[...].astype(jnp.float32)
    u = noise_ref[...].astype(jnp.float32)

    num = (s + EPS) * (u + EPS)
    den = (1.0 - s + EPS) * (1.0 - u + EPS)
    logit = jnp.log(num / den)          # single log instead of four

    out = jax.nn.sigmoid(logit * inv_tau_ref[0])
    out_ref[...] = out.astype(out_ref.dtype)


@jax.jit
def differentiable_binary_sampler(scores, tau, key):
    """Pallas implementation of DifferentiableBinarySampler.forward."""
    orig_shape = scores.shape
    orig_dtype = scores.dtype
    noise_dtype = orig_dtype if jnp.issubdtype(orig_dtype, jnp.floating) else jnp.float32

    flat_s = scores.reshape(-1)
    n = flat_s.shape[0]
    flat_u = jax.random.uniform(key, (n,), dtype=noise_dtype)

    # Pad to a (rows, LANES) slab, rows a multiple of 8 and of the block size.
    rows = -(-n // LANES)
    rows = max(8, ((rows + 7) // 8) * 8)
    block_rows = min(BLOCK_ROWS, rows)
    rows = ((rows + block_rows - 1) // block_rows) * block_rows
    n_pad = rows * LANES
    if n_pad != n:
        flat_s = jnp.pad(flat_s, (0, n_pad - n))
        flat_u = jnp.pad(flat_u, (0, n_pad - n))
    slab_s = flat_s.reshape(rows, LANES)
    slab_u = flat_u.reshape(rows, LANES)

    inv_tau = (1.0 / jnp.asarray(tau, dtype=jnp.float32)).reshape(1)

    grid = (pl.cdiv(rows, block_rows),)

    out = pl.pallas_call(
        _sampler_kernel,
        out_shape=jax.ShapeDtypeStruct((rows, LANES), orig_dtype),
        grid_spec=pltpu.PrefetchScalarGridSpec(
            num_scalar_prefetch=1,          # inv_tau -> SMEM
            grid=grid,
            in_specs=[
                pl.BlockSpec((block_rows, LANES), lambda i, inv_tau: (i, 0)),
                pl.BlockSpec((block_rows, LANES), lambda i, inv_tau: (i, 0)),
            ],
            out_specs=pl.BlockSpec((block_rows, LANES), lambda i, inv_tau: (i, 0)),
        ),
        compiler_params=pltpu.CompilerParams(
            dimension_semantics=("parallel",),   # shard across TCs on v7x
        ),
    )(inv_tau, slab_s, slab_u)

    return out.reshape(-1)[:n].reshape(orig_shape)


if __name__ == "__main__":
    root = jax.random.PRNGKey(0)
    k_scores, k_noise = jax.random.split(root)

    # "scores" are probabilities in (0, 1); shape chosen like a small NCHW tensor.
    scores = jax.random.uniform(k_scores, (2, 4, 16, 16), dtype=jnp.float32)
    tau = 0.5

    out = differentiable_binary_sampler(scores, tau, k_noise)
    out = jax.block_until_ready(out)

    assert out.shape == scores.shape, (out.shape, scores.shape)
    assert out.dtype == scores.dtype
    assert bool(jnp.all(jnp.isfinite(out)))
    assert bool(jnp.all((out >= 0.0) & (out <= 1.0)))

    print("KERNEL_OK")
</pallas_src>

<mosaic_0001>
module attributes {stable_mosaic.version = 11 : i64} {
  func.func @_sampler_kernel(%arg0: i32, %arg1: memref<1xf32, #tpu.memory_space<smem>>, %arg2: memref<8x512xf32, #tpu.memory_space<vmem>>, %arg3: memref<8x512xf32, #tpu.memory_space<vmem>>, %arg4: memref<8x512xf32, #tpu.memory_space<vmem>>) attributes {dimension_semantics = [#tpu.dimension_semantics<parallel>], iteration_bounds = array<i64: 1>, scalar_prefetch = 1 : i64, scratch_operands = 0 : i64, tpu.core_type = #tpu.core_type<tc>, window_params = [{transform_indices = @transform_0, window_bounds = array<i64: 8, 512>}, {transform_indices = @transform_1, window_bounds = array<i64: 8, 512>}, {transform_indices = @transform_2, window_bounds = array<i64: 8, 512>}]} {
    %c0 = arith.constant 0 : index
    %c0_0 = arith.constant 0 : index
    %0 = vector.load %arg2[%c0, %c0_0] : memref<8x512xf32, #tpu.memory_space<vmem>>, vector<8x512xf32>
    %c0_1 = arith.constant 0 : index
    %c0_2 = arith.constant 0 : index
    %1 = vector.load %arg3[%c0_1, %c0_2] : memref<8x512xf32, #tpu.memory_space<vmem>>, vector<8x512xf32>
    %cst = arith.constant 9.99999993E-9 : f32
    %2 = vector.broadcast %cst : f32 to vector<8x512xf32>
    %3 = arith.addf %0, %2 : vector<8x512xf32>
    %cst_3 = arith.constant 9.99999993E-9 : f32
    %4 = vector.broadcast %cst_3 : f32 to vector<8x512xf32>
    %5 = arith.addf %1, %4 : vector<8x512xf32>
    %6 = arith.mulf %3, %5 : vector<8x512xf32>
    %cst_4 = arith.constant 1.000000e+00 : f32
    %7 = vector.broadcast %cst_4 : f32 to vector<8x512xf32>
    %8 = arith.subf %7, %0 : vector<8x512xf32>
    %cst_5 = arith.constant 9.99999993E-9 : f32
    %9 = vector.broadcast %cst_5 : f32 to vector<8x512xf32>
    %10 = arith.addf %8, %9 : vector<8x512xf32>
    %cst_6 = arith.constant 1.000000e+00 : f32
    %11 = vector.broadcast %cst_6 : f32 to vector<8x512xf32>
    %12 = arith.subf %11, %1 : vector<8x512xf32>
    %cst_7 = arith.constant 9.99999993E-9 : f32
    %13 = vector.broadcast %cst_7 : f32 to vector<8x512xf32>
    %14 = arith.addf %12, %13 : vector<8x512xf32>
    %15 = arith.mulf %10, %14 : vector<8x512xf32>
    %16 = arith.divf %6, %15 : vector<8x512xf32>
    %17 = math.log %16 : vector<8x512xf32>
    %c0_8 = arith.constant 0 : index
    %18 = memref.load %arg1[%c0_8] : memref<1xf32, #tpu.memory_space<smem>>
    %19 = vector.broadcast %18 : f32 to vector<8x512xf32>
    %20 = arith.mulf %17, %19 : vector<8x512xf32>
    %21 = arith.negf %20 : vector<8x512xf32>
    %22 = math.exp %21 : vector<8x512xf32>
    %cst_9 = arith.constant 1.000000e+00 : f32
    %23 = vector.broadcast %cst_9 : f32 to vector<8x512xf32>
    %24 = arith.addf %23, %22 : vector<8x512xf32>
    %25 = arith.divf %23, %24 : vector<8x512xf32>
    %c0_10 = arith.constant 0 : index
    %c0_11 = arith.constant 0 : index
    %26 = vector.load %arg4[%c0_10, %c0_11] : memref<8x512xf32, #tpu.memory_space<vmem>>, vector<8x512xf32>
    tpu.vector_store %arg4[%c0_10, %c0_11], %25 {strides = array<i32>} : memref<8x512xf32, #tpu.memory_space<vmem>>, vector<8x512xf32>,
    return
  }
  func.func @transform_0(%arg0: i32, %arg1: memref<1xf32, #tpu.memory_space<smem>>) -> (i32, i32) {
    %c0_i32 = arith.constant 0 : i32
    %c0_i32_0 = arith.constant 0 : i32
    return %arg0, %c0_i32 : i32, i32
  }
  func.func @transform_1(%arg0: i32, %arg1: memref<1xf32, #tpu.memory_space<smem>>) -> (i32, i32) {
    %c0_i32 = arith.constant 0 : i32
    %c0_i32_0 = arith.constant 0 : i32
    return %arg0, %c0_i32 : i32, i32
  }
  func.func @transform_2(%arg0: i32, %arg1: memref<1xf32, #tpu.memory_space<smem>>) -> (i32, i32) {
    %c0_i32 = arith.constant 0 : i32
    %c0_i32_0 = arith.constant 0 : i32
    return %arg0, %c0_i32 : i32, i32
  }
}

</mosaic_0001>

<bundles_post_ra>
// kernel: differentiable_binary_sampler.1
= control target key start
LH: loop header
LB: loop body
LE: loop exit
PB: predicated region body
PF: predicated region fallthrough
CT: control target
= control target key end

     0   :  { %s202_s1 = inlined_call_operand.vmem [shape: f32[8,512], index: 1, kind: input, shape index: {}]   ;;  %s203_s2 = inlined_call_operand.vmem [shape: f32[8,512], index: 2, kind: input, shape index: {}]   ;;  %s204_s0 = inlined_call_operand.<no memory space> [shape: f32[1], index: 0, kind: input, shape index: {}]   ;;  %s205_s3 = inlined_call_operand.vmem [shape: f32[8,512], index: 3, kind: output, shape index: {}]  }
   0x1   :  { %v13_v0 = vld [vmem:[%s202_s1] sm:$0xff]  ;;  %v14_v2 = vld [vmem:[%s202_s1 + $0x8] sm:$0xff]  ;;  %v15_v7 = vld [vmem:[%s202_s1 + $0x10] sm:$0xff]  ;;  %v70_v49 = vstv %s204_s0 }
   0x2   :  { %v17_v1 = vld [vmem:[%s203_s2] sm:$0xff]  ;;  %v33_v3 = vsub.f32 1.0, %v13_v0  ;;  %v18_v5 = vld [vmem:[%s203_s2 + $0x8] sm:$0xff]  ;;  %v34_v6 = vsub.f32 1.0, %v14_v2  ;;  %v19_v8 = vld [vmem:[%s203_s2 + $0x10] sm:$0xff]  ;;  %v35_v13 = vsub.f32 1.0, %v15_v7 }
   0x3   :  { %v41_v4 = vsub.f32 1.0, %v17_v1  ;;  %v42_v12 = vsub.f32 1.0, %v18_v5  ;;  %v43_v15 = vsub.f32 1.0, %v19_v8  ;;  %v16_v16 = vld [vmem:[%s202_s1 + $0x18] sm:$0xff]  ;;  %v21_v28 = vadd.f32 1e-08, %v13_v0 }
   0x4   :  { %v37_v9 = vadd.f32 1e-08, %v33_v3  ;;  %v38_v11 = vadd.f32 1e-08, %v34_v6  ;;  %v20_v17 = vld [vmem:[%s203_s2 + $0x18] sm:$0xff]  ;;  %v36_v22 = vsub.f32 1.0, %v16_v16 }
   0x5   :  { %v45_v10 = vadd.f32 1e-08, %v41_v4  ;;  %v46_v18 = vadd.f32 1e-08, %v42_v12  ;;  %v39_v19 = vadd.f32 1e-08, %v35_v13 }
   0x6   :  { %v47_v20 = vadd.f32 1e-08, %v43_v15  ;;  %v44_v23 = vsub.f32 1.0, %v20_v17  ;;  %v40_v25 = vadd.f32 1e-08, %v36_v22 }
   0x7   :  { %v49_v14 = vmul.f32 %v45_v10, %v37_v9  ;;  %v50_v21 = vmul.f32 %v46_v18, %v38_v11  ;;  %v25_v29 = vadd.f32 1e-08, %v17_v1  ;;  %v22_v30 = vadd.f32 1e-08, %v14_v2 }
   0x8   :  { %v51_v24 = vmul.f32 %v47_v20, %v39_v19  ;;  %v48_v26 = vadd.f32 1e-08, %v44_v23  ;;  %v26_v31 = vadd.f32 1e-08, %v18_v5  ;;  %v23_v33 = vadd.f32 1e-08, %v15_v7 }
   0x9   :  { %111 = vrcp.f32 %v49_v14  ;;  %v29_v32 = vmul.f32 %v25_v29, %v21_v28  ;;  %v27_v34 = vadd.f32 1e-08, %v19_v8  ;;  %v24_v37 = vadd.f32 1e-08, %v16_v16 }
   0xa   :  { %113 = vrcp.f32 %v50_v21  ;;  %v52_v27 = vmul.f32 %v48_v26, %v40_v25  ;;  %v30_v36 = vmul.f32 %v26_v31, %v22_v30  ;;  %v28_v38 = vadd.f32 1e-08, %v20_v17 }
   0xb   :  { %115 = vrcp.f32 %v51_v24  ;;  %v31_v40 = vmul.f32 %v27_v34, %v23_v33 }
   0xc   :  { %117 = vrcp.f32 %v52_v27  ;;  %v32_v44 = vmul.f32 %v28_v38, %v24_v37 }
  0x16   :  { %v112_v35 = vpop.eup %111 }
  0x17   :  { %v54_v39 = vmul.f32 %v112_v35, %v29_v32  ;;  %v114_v41 = vpop.eup %113 }
  0x18   :  { %v116_v42 = vpop.eup %115  ;;  %v56_v43 = vmul.f32 %v114_v41, %v30_v36 }
  0x19   :  { %119 = vlog2.f32 %v54_v39  ;;  %v58_v45 = vmul.f32 %v116_v42, %v31_v40  ;;  %v118_v46 = vpop.eup %117 }
  0x1a   :  { %121 = vlog2.f32 %v56_v43  ;;  %v60_v47 = vmul.f32 %v118_v46, %v32_v44 }
  0x1b   :  { %123 = vlog2.f32 %v58_v45 }
  0x1c   :  { %125 = vlog2.f32 %v60_v47 }
  0x26   :  { %v120_v48 = vpop.eup %119 }
  0x27   :  { %v62_v50 = vmul.f32 0.6931472, %v120_v48  ;;  %v122_v51 = vpop.eup %121 }
  0x28   :  { %v124_v53 = vpop.eup %123  ;;  %v64_v54 = vmul.f32 0.6931472, %v122_v51 }
  0x29   :  { %v71_v52 = vmul.f32 %v70_v49, %v62_v50  ;;  %v66_v56 = vmul.f32 0.6931472, %v124_v53  ;;  %v126_v58 = vpop.eup %125 }
  0x2a   :  { %v72_v57 = vmul.f32 %v70_v49, %v64_v54  ;;  %v68_v61 = vmul.f32 0.6931472, %v126_v58 }
  0x2b   :  { %v107_v55 = vmul.f32 -1.442695, %v71_v52  ;;  %v73_v59 = vmul.f32 %v70_v49, %v66_v56 }
  0x2c   :  { %v108_v60 = vmul.f32 -1.442695, %v72_v57  ;;  %v74_v63 = vmul.f32 %v70_v49, %v68_v61 }
  0x2d   :  { %127 = vpow2.f32 %v107_v55  ;;  %v109_v62 = vmul.f32 -1.442695, %v73_v59 }
  0x2e   :  { %129 = vpow2.f32 %v108_v60  ;;  %v110_v0 = vmul.f32 -1.442695, %v74_v63 }
  0x2f   :  { %131 = vpow2.f32 %v109_v62 }
  0x30   :  { %133 = vpow2.f32 %v110_v0 }
  0x3a   :  { %v128_v1 = vpop.eup %127 }
  0x3b   :  { %v87_v2 = vadd.f32 1.0, %v128_v1  ;;  %v130_v3 = vpop.eup %129 }
  0x3c   :  { %v132_v4 = vpop.eup %131  ;;  %v88_v5 = vadd.f32 1.0, %v130_v3 }
  0x3d   :  { %135 = vrcp.f32 %v87_v2  ;;  %v89_v6 = vadd.f32 1.0, %v132_v4  ;;  %v134_v7 = vpop.eup %133 }
  0x3e   :  { %137 = vrcp.f32 %v88_v5  ;;  %v90_v8 = vadd.f32 1.0, %v134_v7 }
  0x3f   :  { %139 = vrcp.f32 %v89_v6 }
  0x40   :  { %141 = vrcp.f32 %v90_v8 }
  0x4a   :  { %v136_v9 = vpop.eup %135 }
  0x4b   :  { %99 = vst [vmem:[%s205_s3] sm:$0xff] %v136_v9  ;;  %v138_v10 = vpop.eup %137 }
  0x4c   :  { %v140_v11 = vpop.eup %139  ;;  %100 = vst [vmem:[%s205_s3 + $0x8] sm:$0xff] %v138_v10 }
  0x4d   :  { %101 = vst [vmem:[%s205_s3 + $0x10] sm:$0xff] %v140_v11  ;;  %v142_v12 = vpop.eup %141 }
  0x4e   :  { %102 = vst [vmem:[%s205_s3 + $0x18] sm:$0xff] %v142_v12 }

</bundles_post_ra>
